<compile_context>
chip_gen: v7x
topology: tpu7x:2x2x1
jax: 0.10.0
libtpu: 0.0.40
codegen_flags: <defaults>
</compile_context>

<pallas_src>
import functools

import jax
import jax.numpy as jnp
from jax import lax
from jax.experimental import pallas as pl
from jax.experimental.pallas import tpu as pltpu


def _round_up(x, m):
    return ((x + m - 1) // m) * m


def _pick_ts(S):
    """Token tile size: big (<=512, roofline), multiple of 8, divides S if possible."""
    if S <= 512:
        return _round_up(max(S, 8), 8)
    for ts in (512, 448, 384, 320, 256, 192, 128, 64, 32, 16, 8):
        if S % ts == 0:
            return ts
    return 512


def bert_embeddings_kernel(lab_sref,            # (B,) int32 scalar prefetch (used by index_map only)
                           words_ref,           # (1, TS, H_pad) f32 pre-gathered word embeddings
                           tt_ref,              # (1, TS, 1) int32 token-type ids
                           pos_ref,             # (TS, H_pad) f32 position embeddings for this tile
                           lab_row_ref,         # (1, 1, H_pad) f32 label row for this batch row
                           type_tab_ref,        # (T, H_pad) f32 token-type table (constant index)
                           gamma_ref,           # (1, H_pad) f32
                           beta_ref,            # (1, H_pad) f32
                           out_ref,             # (1, TS, H_pad) f32
                           *, eps, hidden_size, num_types):
    del lab_sref  # only consumed by the label-row index_map

    # Sum of word + position + label embeddings (pure VPU adds).
    x = words_ref[0] + pos_ref[...] + lab_row_ref[0]          # (TS, H_pad)

    # Token-type embedding: tiny vocab -> direct VPU select, no mask-multiply.
    tt = tt_ref[0]                                            # (TS, 1) int32
    if num_types == 2:
        x = x + jnp.where(tt == 0,
                          type_tab_ref[pl.ds(0, 1), :],
                          type_tab_ref[pl.ds(1, 1), :])
    else:
        for v in range(num_types):
            x = x + jnp.where(tt == v, type_tab_ref[pl.ds(v, 1), :], 0.0)

    # Fused single-pass LayerNorm statistics over the TRUE hidden size.
    # Padded hidden lanes of x are exactly zero, so they do not perturb sums.
    inv_h = jnp.float32(1.0 / hidden_size)
    s1 = jnp.sum(x, axis=-1, keepdims=True)
    s2 = jnp.sum(x * x, axis=-1, keepdims=True)
    mean = s1 * inv_h
    var = jnp.maximum(s2 * inv_h - mean * mean, 0.0)          # clamp: no NaN on degenerate rows
    y = (x - mean) * lax.rsqrt(var + eps)
    # gamma/beta are zero in padded lanes, so padded output lanes write 0.
    out_ref[0] = (y * gamma_ref[...] + beta_ref[...]).astype(out_ref.dtype)


def prepare_params(params):
    """One-time layout/padding of the embedding tables (hoisted out of the per-call path)."""
    H = params["word"].shape[1]
    H_pad = _round_up(H, 128)

    def pad_h(tab):
        tab = tab.astype(jnp.float32)
        if H_pad == H:
            return tab
        return jnp.pad(tab, ((0, 0), (0, H_pad - H)))

    def pad_vec(v):
        v = v.astype(jnp.float32)
        if H_pad != H:
            v = jnp.pad(v, (0, H_pad - H))
        return v.reshape(1, H_pad)

    return {
        "word": pad_h(params["word"]),                               # (V, H_pad)
        "label": pad_h(params["label"]).reshape(-1, 1, H_pad),       # (L, 1, H_pad)
        "position": pad_h(params["position"]),                       # (P, H_pad)
        "token_type": pad_h(params["token_type"]),                   # (T, H_pad)
        "gamma": pad_vec(params["gamma"]),                           # (1, H_pad)
        "beta": pad_vec(params["beta"]),                             # (1, H_pad)
        "H": H,
        "H_pad": H_pad,
    }


def bert_embeddings(input_ids, label, token_type_ids, prep, eps=1e-12):
    """input_ids/token_type_ids: (B, S) int; label: (B,) int; prep from prepare_params()."""
    B, S = input_ids.shape
    H, H_pad = prep["H"], prep["H_pad"]
    T = prep["token_type"].shape[0]

    TS = _pick_ts(S)
    S_pad = _round_up(S, TS)
    n_s_tiles = S_pad // TS

    # Pad the (tiny) id arrays BEFORE the gather so the (B, S_pad, H_pad) slab is
    # produced directly in its final shape (no post-gather full-slab pad pass).
    ids = input_ids.astype(jnp.int32)
    tt_ids = token_type_ids.astype(jnp.int32)
    if S_pad != S:
        ids = jnp.pad(ids, ((0, 0), (0, S_pad - S)))        # id 0 for padded positions
        tt_ids = jnp.pad(tt_ids, ((0, 0), (0, S_pad - S)))

    # Word gather done by XLA (HBM-bandwidth bound); kernel only does add + LN.
    words = jnp.take(prep["word"], ids, axis=0)             # (B, S_pad, H_pad)
    tt = tt_ids.reshape(B, S_pad, 1)                         # (B, S_pad, 1)

    # Position embeddings for rows 0..S_pad-1 (tiny compared with the slab).
    max_pos = prep["position"].shape[0]
    take = min(S_pad, max_pos)
    pos = prep["position"][:take]
    if take < S_pad:
        pos = jnp.pad(pos, ((0, S_pad - take), (0, 0)))      # (S_pad, H_pad)

    label = label.astype(jnp.int32)                          # (B,) scalar prefetch

    # Grid (n_s_tiles, B): the position tile's block index is constant along the
    # inner batch axis, so it is fetched n_s_tiles times (not B * n_s_tiles).
    grid_spec = pltpu.PrefetchScalarGridSpec(
        num_scalar_prefetch=1,
        grid=(n_s_tiles, B),
        in_specs=[
            pl.BlockSpec((1, TS, H_pad), lambda j, b, lab: (b, j, 0)),      # words slab
            pl.BlockSpec((1, TS, 1), lambda j, b, lab: (b, j, 0)),          # token-type ids
            pl.BlockSpec((TS, H_pad), lambda j, b, lab: (j, 0)),            # position tile
            pl.BlockSpec((1, 1, H_pad), lambda j, b, lab: (lab[b], 0, 0)),  # label row (prefetch-indexed)
            pl.BlockSpec(prep["token_type"].shape, lambda j, b, lab: (0, 0)),  # type table (resident)
            pl.BlockSpec((1, H_pad), lambda j, b, lab: (0, 0)),             # gamma
            pl.BlockSpec((1, H_pad), lambda j, b, lab: (0, 0)),             # beta
        ],
        out_specs=pl.BlockSpec((1, TS, H_pad), lambda j, b, lab: (b, j, 0)),
    )

    kernel = functools.partial(bert_embeddings_kernel, eps=eps,
                               hidden_size=H, num_types=T)
    out = pl.pallas_call(
        kernel,
        out_shape=jax.ShapeDtypeStruct((B, S_pad, H_pad), jnp.float32),
        grid_spec=grid_spec,
        compiler_params=pltpu.CompilerParams(
            dimension_semantics=("parallel", "parallel")),
    )(label, words, tt, pos, prep["label"], prep["token_type"],
      prep["gamma"], prep["beta"])

    # Only slice when padding was actually applied (avoids a full-slab copy for
    # BERT-base/large where H % 128 == 0 and TS divides S).
    if S_pad != S or H_pad != H:
        out = out[:, :S, :H]
    return out


def ref_forward(input_ids, label, token_type_ids, params, eps=1e-12):
    """Pure-JAX reference mirroring the PyTorch forward (eval mode)."""
    B, S = input_ids.shape
    words = params["word"][input_ids]
    labels = params["label"][jnp.broadcast_to(label[:, None], (B, S))]
    positions = params["position"][jnp.broadcast_to(jnp.arange(S), (B, S))]
    toktype = params["token_type"][token_type_ids]
    x = (words + labels + positions + toktype).astype(jnp.float32)
    mean = x.mean(-1, keepdims=True)
    var = ((x - mean) ** 2).mean(-1, keepdims=True)
    y = (x - mean) / jnp.sqrt(var + eps)
    return y * params["gamma"] + params["beta"]


if __name__ == "__main__":
    # Small config consistent with the module.
    B, S, H = 2, 8, 32
    VOCAB, LABELS, MAX_POS, TYPES = 64, 8, 16, 2

    key = jax.random.PRNGKey(0)
    k_w, k_l, k_p, k_t, k_ids, k_lab, k_tt = jax.random.split(key, 7)

    word_tab = jax.random.normal(k_w, (VOCAB, H), jnp.float32) * 0.02
    word_tab = word_tab.at[0].set(0.0)                       # padding_idx=0
    label_tab = jax.random.normal(k_l, (LABELS, H), jnp.float32) * 0.02
    pos_tab = jax.random.normal(k_p, (MAX_POS, H), jnp.float32) * 0.02
    type_tab = jax.random.normal(k_t, (TYPES, H), jnp.float32) * 0.02

    params = {
        "word": word_tab,
        "label": label_tab,
        "position": pos_tab,
        "token_type": type_tab,
        "gamma": jnp.ones((H,), jnp.float32),
        "beta": jnp.zeros((H,), jnp.float32),
    }

    input_ids = jax.random.randint(k_ids, (B, S), 0, VOCAB, dtype=jnp.int32)
    label = jax.random.randint(k_lab, (B,), 0, LABELS, dtype=jnp.int32)
    token_type_ids = jax.random.randint(k_tt, (B, S), 0, TYPES, dtype=jnp.int32)

    prep = prepare_params(params)                            # one-time table layout
    out = bert_embeddings(input_ids, label, token_type_ids, prep)
    out = jax.block_until_ready(out)

    ref = ref_forward(input_ids, label, token_type_ids, params)
    assert out.shape == (B, S, H)
    assert jnp.allclose(out, ref, atol=1e-5, rtol=1e-5), "mismatch vs reference"

    print("KERNEL_OK")
</pallas_src>

<mosaic_0001>
module attributes {stable_mosaic.version = 11 : i64} {
  func.func @bert_embeddings_kernel(%arg0: i32, %arg1: i32, %arg2: memref<2xi32, #tpu.memory_space<smem>>, %arg3: memref<1x8x128xf32, #tpu.memory_space<vmem>>, %arg4: memref<1x8x1xi32, #tpu.memory_space<vmem>>, %arg5: memref<8x128xf32, #tpu.memory_space<vmem>>, %arg6: memref<1x1x128xf32, #tpu.memory_space<vmem>>, %arg7: memref<2x128xf32, #tpu.memory_space<vmem>>, %arg8: memref<1x128xf32, #tpu.memory_space<vmem>>, %arg9: memref<1x128xf32, #tpu.memory_space<vmem>>, %arg10: memref<1x8x128xf32, #tpu.memory_space<vmem>>) attributes {dimension_semantics = [#tpu.dimension_semantics<parallel>, #tpu.dimension_semantics<parallel>], iteration_bounds = array<i64: 1, 2>, scalar_prefetch = 1 : i64, scratch_operands = 0 : i64, tpu.core_type = #tpu.core_type<tc>, window_params = [{transform_indices = @transform_0, window_bounds = array<i64: 1, 8, 128>}, {transform_indices = @transform_1, window_bounds = array<i64: 1, 8, 1>}, {transform_indices = @transform_2, window_bounds = array<i64: 8, 128>}, {transform_indices = @transform_3, window_bounds = array<i64: 1, 1, 128>}, {pipeline_mode = #tpu.pipeline_mode<synchronous>, transform_indices = @transform_4, window_bounds = array<i64: 2, 128>}, {pipeline_mode = #tpu.pipeline_mode<synchronous>, transform_indices = @transform_5, window_bounds = array<i64: 1, 128>}, {pipeline_mode = #tpu.pipeline_mode<synchronous>, transform_indices = @transform_6, window_bounds = array<i64: 1, 128>}, {transform_indices = @transform_7, window_bounds = array<i64: 1, 8, 128>}]} {
    %c0 = arith.constant 0 : index
    %c0_0 = arith.constant 0 : index
    %c0_1 = arith.constant 0 : index
    %0 = vector.load %arg3[%c0, %c0_0, %c0_1] : memref<1x8x128xf32, #tpu.memory_space<vmem>>, vector<1x8x128xf32>
    %1 = vector.shape_cast %0 : vector<1x8x128xf32> to vector<8x128xf32>
    %c0_2 = arith.constant 0 : index
    %c0_3 = arith.constant 0 : index
    %2 = vector.load %arg5[%c0_2, %c0_3] : memref<8x128xf32, #tpu.memory_space<vmem>>, vector<8x128xf32>
    %3 = arith.addf %1, %2 : vector<8x128xf32>
    %c0_4 = arith.constant 0 : index
    %c0_5 = arith.constant 0 : index
    %c0_6 = arith.constant 0 : index
    %4 = vector.load %arg6[%c0_4, %c0_5, %c0_6] : memref<1x1x128xf32, #tpu.memory_space<vmem>>, vector<1x1x128xf32>
    %5 = vector.shape_cast %4 : vector<1x1x128xf32> to vector<1x128xf32>
    %6 = vector.broadcast %5 : vector<1x128xf32> to vector<8x128xf32>
    %7 = arith.addf %3, %6 : vector<8x128xf32>
    %c0_7 = arith.constant 0 : index
    %c0_8 = arith.constant 0 : index
    %c0_9 = arith.constant 0 : index
    %8 = vector.load %arg4[%c0_7, %c0_8, %c0_9] : memref<1x8x1xi32, #tpu.memory_space<vmem>>, vector<1x8x1xi32>
    %9 = vector.shape_cast %8 : vector<1x8x1xi32> to vector<8x1xi32>
    %c0_i32 = arith.constant 0 : i32
    %10 = vector.broadcast %c0_i32 : i32 to vector<8x1xi32>
    %11 = arith.cmpi eq, %9, %10 : vector<8x1xi32>
    %c0_10 = arith.constant 0 : index
    %c0_11 = arith.constant 0 : index
    %12 = vector.load %arg7[%c0_10, %c0_11] : memref<2x128xf32, #tpu.memory_space<vmem>>, vector<1x128xf32>
    %c1 = arith.constant 1 : index
    %c0_12 = arith.constant 0 : index
    %13 = vector.load %arg7[%c1, %c0_12] : memref<2x128xf32, #tpu.memory_space<vmem>>, vector<1x128xf32>
    %14 = vector.shape_cast %11 : vector<8x1xi1> to vector<8x1xi1>
    %15 = vector.broadcast %14 : vector<8x1xi1> to vector<8x128xi1>
    %16 = vector.shape_cast %12 : vector<1x128xf32> to vector<1x128xf32>
    %17 = vector.broadcast %16 : vector<1x128xf32> to vector<8x128xf32>
    %18 = vector.shape_cast %13 : vector<1x128xf32> to vector<1x128xf32>
    %19 = vector.broadcast %18 : vector<1x128xf32> to vector<8x128xf32>
    %20 = arith.select %15, %17, %19 : vector<8x128xi1>, vector<8x128xf32>
    %21 = arith.addf %7, %20 : vector<8x128xf32>
    %cst = arith.constant dense<0.000000e+00> : vector<8xf32>
    %22 = vector.multi_reduction <add>, %21, %cst [1] : vector<8x128xf32> to vector<8xf32>
    %23 = vector.shape_cast %22 : vector<8xf32> to vector<8x1xf32>
    %24 = arith.mulf %21, %21 : vector<8x128xf32>
    %cst_13 = arith.constant dense<0.000000e+00> : vector<8xf32>
    %25 = vector.multi_reduction <add>, %24, %cst_13 [1] : vector<8x128xf32> to vector<8xf32>
    %26 = vector.shape_cast %25 : vector<8xf32> to vector<8x1xf32>
    %cst_14 = arith.constant 3.125000e-02 : f32
    %27 = vector.broadcast %cst_14 : f32 to vector<8x1xf32>
    %28 = arith.mulf %23, %27 : vector<8x1xf32>
    %cst_15 = arith.constant 3.125000e-02 : f32
    %29 = vector.broadcast %cst_15 : f32 to vector<8x1xf32>
    %30 = arith.mulf %26, %29 : vector<8x1xf32>
    %31 = arith.mulf %28, %28 : vector<8x1xf32>
    %32 = arith.subf %30, %31 : vector<8x1xf32>
    %cst_16 = arith.constant 0.000000e+00 : f32
    %33 = vector.broadcast %cst_16 : f32 to vector<8x1xf32>
    %34 = arith.maximumf %32, %33 : vector<8x1xf32>
    %35 = vector.broadcast %28 : vector<8x1xf32> to vector<8x128xf32>
    %36 = arith.subf %21, %35 : vector<8x128xf32>
    %cst_17 = arith.constant 9.99999996E-13 : f32
    %37 = vector.broadcast %cst_17 : f32 to vector<8x1xf32>
    %38 = arith.addf %34, %37 : vector<8x1xf32>
    %39 = math.rsqrt %38 : vector<8x1xf32>
    %40 = vector.broadcast %39 : vector<8x1xf32> to vector<8x128xf32>
    %41 = arith.mulf %36, %40 : vector<8x128xf32>
    %c0_18 = arith.constant 0 : index
    %c0_19 = arith.constant 0 : index
    %42 = vector.load %arg8[%c0_18, %c0_19] : memref<1x128xf32, #tpu.memory_space<vmem>>, vector<1x128xf32>
    %43 = vector.broadcast %42 : vector<1x128xf32> to vector<8x128xf32>
    %44 = arith.mulf %41, %43 : vector<8x128xf32>
    %c0_20 = arith.constant 0 : index
    %c0_21 = arith.constant 0 : index
    %45 = vector.load %arg9[%c0_20, %c0_21] : memref<1x128xf32, #tpu.memory_space<vmem>>, vector<1x128xf32>
    %46 = vector.broadcast %45 : vector<1x128xf32> to vector<8x128xf32>
    %47 = arith.addf %44, %46 : vector<8x128xf32>
    %c0_22 = arith.constant 0 : index
    %c0_23 = arith.constant 0 : index
    %c0_24 = arith.constant 0 : index
    %48 = vector.load %arg10[%c0_22, %c0_23, %c0_24] : memref<1x8x128xf32, #tpu.memory_space<vmem>>, vector<1x8x128xf32>
    %49 = vector.shape_cast %48 : vector<1x8x128xf32> to vector<8x128xf32>
    %50 = vector.shape_cast %47 : vector<8x128xf32> to vector<1x8x128xf32>
    tpu.vector_store %arg10[%c0_22, %c0_23, %c0_24], %50 {strides = array<i32>} : memref<1x8x128xf32, #tpu.memory_space<vmem>>, vector<1x8x128xf32>,
    return
  }
  func.func @transform_0(%arg0: i32, %arg1: i32, %arg2: memref<2xi32, #tpu.memory_space<smem>>) -> (i32, i32, i32) {
    %c0_i32 = arith.constant 0 : i32
    %c0_i32_0 = arith.constant 0 : i32
    return %arg1, %arg0, %c0_i32 : i32, i32, i32
  }
  func.func @transform_1(%arg0: i32, %arg1: i32, %arg2: memref<2xi32, #tpu.memory_space<smem>>) -> (i32, i32, i32) {
    %c0_i32 = arith.constant 0 : i32
    %c0_i32_0 = arith.constant 0 : i32
    return %arg1, %arg0, %c0_i32 : i32, i32, i32
  }
  func.func @transform_2(%arg0: i32, %arg1: i32, %arg2: memref<2xi32, #tpu.memory_space<smem>>) -> (i32, i32) {
    %c0_i32 = arith.constant 0 : i32
    %c0_i32_0 = arith.constant 0 : i32
    return %arg0, %c0_i32 : i32, i32
  }
  func.func @transform_3(%arg0: i32, %arg1: i32, %arg2: memref<2xi32, #tpu.memory_space<smem>>) -> (i32, i32, i32) {
    %0 = arith.index_cast %arg1 : i32 to index
    %1 = memref.load %arg2[%0] : memref<2xi32, #tpu.memory_space<smem>>
    %c0_i32 = arith.constant 0 : i32
    %c0_i32_0 = arith.constant 0 : i32
    %c0_i32_1 = arith.constant 0 : i32
    return %1, %c0_i32, %c0_i32_0 : i32, i32, i32
  }
  func.func @transform_4(%arg0: i32, %arg1: i32, %arg2: memref<2xi32, #tpu.memory_space<smem>>) -> (i32, i32) {
    %c0_i32 = arith.constant 0 : i32
    %c0_i32_0 = arith.constant 0 : i32
    %c0_i32_1 = arith.constant 0 : i32
    return %c0_i32, %c0_i32_0 : i32, i32
  }
  func.func @transform_5(%arg0: i32, %arg1: i32, %arg2: memref<2xi32, #tpu.memory_space<smem>>) -> (i32, i32) {
    %c0_i32 = arith.constant 0 : i32
    %c0_i32_0 = arith.constant 0 : i32
    %c0_i32_1 = arith.constant 0 : i32
    return %c0_i32, %c0_i32_0 : i32, i32
  }
  func.func @transform_6(%arg0: i32, %arg1: i32, %arg2: memref<2xi32, #tpu.memory_space<smem>>) -> (i32, i32) {
    %c0_i32 = arith.constant 0 : i32
    %c0_i32_0 = arith.constant 0 : i32
    %c0_i32_1 = arith.constant 0 : i32
    return %c0_i32, %c0_i32_0 : i32, i32
  }
  func.func @transform_7(%arg0: i32, %arg1: i32, %arg2: memref<2xi32, #tpu.memory_space<smem>>) -> (i32, i32, i32) {
    %c0_i32 = arith.constant 0 : i32
    %c0_i32_0 = arith.constant 0 : i32
    return %arg1, %arg0, %c0_i32 : i32, i32, i32
  }
}

</mosaic_0001>

<bundles_post_ra>
// kernel: tpu_custom_call.1
= control target key start
LH: loop header
LB: loop body
LE: loop exit
PB: predicated region body
PF: predicated region fallthrough
CT: control target
= control target key end

     0   :  { %s915_s0 = inlined_call_operand.vmem [shape: s32[2], index: 0, kind: input, shape index: {}]   ;;  %s916_s1 = inlined_call_operand.vmem [shape: f32[2,8,128], index: 1, kind: input, shape index: {}]   ;;  %s917_s2 = inlined_call_operand.vmem [shape: s32[2,8,1], index: 2, kind: input, shape index: {}]   ;;  %s918_s3 = inlined_call_operand.vmem [shape: f32[8,128], index: 3, kind: input, shape index: {}]   ;;  %s919_s4 = inlined_call_operand.vmem [shape: f32[8,1,128], index: 4, kind: input, shape index: {}]   ;;  %s920_s5 = inlined_call_operand.vmem [shape: f32[2,128], index: 5, kind: input, shape index: {}]   ;;  %s921_s6 = inlined_call_operand.vmem [shape: f32[1,128], index: 6, kind: input, shape index: {}]   ;;  %s922_s7 = inlined_call_operand.vmem [shape: f32[1,128], index: 7, kind: input, shape index: {}]   ;;  %s923_s8 = inlined_call_operand.hbm [shape: f32[2,8,128], index: 8, kind: output, shape index: {}]  }
   0x1   :  { %924 = sst [smem:[#allocation8_spill]] %s917_s2  ;;  %s13_s29 = sshll.u32 %s915_s0, 4  ;;  %s14_s29 = int_to_ptr.vmem [resolvable:$true] %s13_s29 }
   0x2   :  { %s636_s30 = scalar_lea.vmem %s14_s29, 16  ;;  %p641_p1 = scmp.lt.s32.totalorder %s14_s29, %s14_s29 }
   0x3   :  { %p637_p0 = scmp.ne.s32.totalorder %s14_s29, %s636_s30  ;;  %p642_p2 = scmp.lt.s32.totalorder %s636_s30, %s636_s30 }
   0x5   :  { %p643_p3 = por %p642_p2, %p641_p1 }
   0x7   :  { %p644_p4 = pnand %p643_p3, %p637_p0 }
   0x9   :  { %647 = shalt.err (!%p644_p4)  }
   0xa   :  { %s730_s9 = smov [#allocation3]  }
   0xb   :  { %16 = dma.vmem_to_smem %s14_s29, 16, %s730_s9, [#allocation2] }
   0xc   :  { %700 = dma.done.wait [#allocation2], 16 }
   0xd   :  { %701 = vsyncadd [#allocation2], 4294967280 }
   0xe   :  { %18 = sfence }
   0xf   :  { %19 = vsyncpa [#allocation5], 0 }
  0x10   :  { %21 = vsyncpa [#allocation5 + $0x1], 0  ;;  %s781_s10 = smov 0   ;;  %s783_s11 = smov 0  }
  0x11   :  { %s785_s0 = smov 0   ;;  %s787_s12 = smov 0  }
  0x12   :  { %s789_s13 = smov 0   ;;  %s791_s14 = smov 0  }
  0x13 LB: > { %s558_s15 = sadd.s32 4294967295, %s728_s14   ;;  %s559_s16 = sadd.s32 4294967294, %s728_s14   ;;  %s728_s14 = sphi %s791_s14, %s27_s14   ;;  %s724_s13 = sphi %s789_s13, %s932_s13   ;;  %s720_s12 = sphi %s787_s12, %s931_s12   ;;  %s716_s0 = sphi %s785_s0, %s930_s0   ;;  %s712_s11 = sphi %s783_s11, %s929_s11   ;;  %s708_s10 = sphi %s781_s10, %s928_s10  }
  0x14   : > { %s36_s17 = sadd.s32 1, %s724_s13  ;;  %s221_s18 = sadd.s32 1, %s716_s0 }
  0x15   : > { %p37_p5 = scmp.ge.s32.totalorder %s36_s17, 2  ;;  %p231_p6 = scmp.ne.s32.totalorder %s716_s0, %s712_s11 }
  0x16   : > { %p232_p7 = scmp.eq.s32.totalorder %s558_s15, 1  ;;  %p237_p8 = scmp.ne.s32.totalorder %s712_s11, %s708_s10 }
  0x17   : > { %s934_s17 = smov (%p37_p5, %s36_s17), 0  ;;  %p238_p10 = scmp.eq.s32.totalorder %s559_s16, 1 }
  0x18   : > { %p821_p9 = por %p232_p7, %p231_p6  ;;  %s216_s20 = ssub.s32 %s724_s13, %s934_s17 }
  0x19   : > { %p563_p11 = scmp.ge.s32.totalorder %s728_s14, 1  ;;  %p219_p12 = scmp.eq.s32.totalorder %s216_s20, 0 }
  0x1a   : > { %p828_p13 = por %p238_p10, %p237_p8  ;;  %p300_p0 = scmp.lt.s32.totalorder %s728_s14, 3 }
  0x1b   : > { %s834_s22 = scalar_select %p219_p12, %s716_s0, %s221_s18  }
  0x1c   : > { %p301_p1 = pnand %p563_p11, %p300_p0 }
  0x1d   : > { %p349_p2 = scmp.lt.s32.totalorder (!%p301_p1), %s720_s12, 1  ;;  %v731_v0 = vmov (!%p301_p1), 0   ;;  %s927_s2 = sld [smem:[#allocation8_spill]] (!%p301_p1)  ;;  %v373_v3 = vld [vmem:[%s918_s3] sm:$0xff] (!%p301_p1) }
  0x1e   : > { %304 = sbr.rel (%p301_p1) target bundleno = 359 (0x167), region = 48  ;;  %633 = vset.pattern.permute.xlu0 (!%p301_p1), %v731_v0  ;;  %s367_s28 = sld [smem:[#allocation3 + %s720_s12]] (!%p301_p1)  ;;  %v568_v7 = vld [vmem:[%s920_s5] ss:$0 sm:$0xff] (!%p301_p1)  ;;  %v569_v8 = vld [vmem:[%s920_s5 + $0x1] ss:$0 sm:$0xff] (!%p301_p1) }
  0x1f   : > { %v570_v24 = vld [vmem:[%s921_s6] ss:$0 sm:$0xff] (!%p301_p1)  ;;  %s573_s15 = sshll.u32 (!%p301_p1), %s720_s12, 7 }
  0x20   : > { %v571_v26 = vld [vmem:[%s922_s7] ss:$0 sm:$0xff] (!%p301_p1)  ;;  %s868_s25 = scalar_lea.hbm (!%p301_p1), %s923_s8, %s573_s15 }
  0x24   : > { %p368_p3 = scmp.lt.s32.totalorder (!%p301_p1), %s367_s28, 7 }
  0x25   : > { %s350_s23 = scalar_select %p349_p2, %s720_s12, 1 }
  0x26   : > { %s936_s28 = smov (!%p368_p3, %s367_s28), 7  ;;  %s732_s12 = smov [#allocation4]  }
  0x27   : > { %s565_s24 = sshll.u32 %s350_s23, 3  ;;  %s370_s23 = scalar_lea.vmem %s919_s4, %s936_s28 }
  0x28   : > { %s362_s27 = scalar_lea.vmem %s927_s2, %s565_s24  ;;  %s355_s9 = scalar_lea.vmem %s916_s1, %s565_s24  ;;  %v567_v6 = vld [vmem:[%s370_s23] ss:$0 sm:$0xff] }
  0x29   : > { %v383_v1 = vld [vmem:[%s362_s27] sm:$0xff]  ;;  %s346_s2 = sand.u32 1, %s712_s11  }
  0x2a   : > { %vm384_vm0 = vcmp.eq.s32.totalorder %v383_v1, 0  ;;  %v372_v4 = vld [vmem:[%s355_s9] sm:$0xff]  ;;  %s564_s24 = sshll.u32 %s346_s2, 3  ;;  %s434_s26 = scalar_lea.sflag [#allocation5], %s346_s2 }
  0x2b   : > { %v387_v2 = vsel %vm384_vm0, 1, %v731_v0  ;;  %v374_v5 = vadd.f32 %v373_v3, %v372_v4  ;;  %s348_s16 = scalar_lea.vmem [#allocation4], %s564_s24  ;;  %s652_s24 = sshll.u32 %s732_s12, 4  ;;  %s653_s24 = int_to_ptr.vmem [resolvable:$false] %s652_s24 }
  0x2c   : > { %389 = vperm.xlu0 %633, %v387_v2   ;;  %s448_s18 = sshll.u32 %s348_s16, 4  ;;  %s654_s28 = scalar_lea.vmem %s653_s24, 256  ;;  %s870_s18 = int_to_ptr.vmem [resolvable:$true] %s448_s18 }
  0x2d   : > { %v382_v9 = vadd.f32 %v567_v6, %v374_v5  ;;  %s648_s27 = scalar_lea.vmem %s870_s18, 128  ;;  %p655_p7 = scmp.lt.s32.totalorder %s870_s18, %s653_s24 }
  0x2e   : > { %p649_p4 = scmp.ne.s32.totalorder %s870_s18, %s648_s27  ;;  %p656_p8 = scmp.lt.s32.totalorder %s654_s28, %s648_s27 }
  0x30   : > { %p650_p5 = pnand %p649_p4, %p821_p9  ;;  %p657_p10 = por %p656_p8, %p655_p7 }
  0x32   : > { %p651_p6 = pneg %p650_p5 }
  0x34   : > { %p658_p11 = pnand %p657_p10, %p651_p6 }
  0xab   : > { %v390_v10 = vpop.permute.xlu0 %389 }
  0xac   : > { %vm391_vm1 = vcmp.eq.s32.totalorder %v390_v10, 1 }
  0xad   : > { %v400_v11 = vsel %vm391_vm1, %v568_v7, %v569_v8 }
  0xae   : > { %v401_v12 = vadd.f32 %v400_v11, %v382_v9 }
  0xb0   : > { %402 = vadd.xlane.f32.xlu0 %v401_v12  ;;  %v404_v13 = vmul.f32 %v401_v12, %v401_v12 }
  0xb2   : > { %405 = vadd.xlane.f32.xlu1 %v404_v13 }
 0x13d   : > { %v403_v14 = vpop.xlane.xlu0 %402 }
 0x13e   : > { %v407_v15 = vmul.f32 0.03125, %v403_v14 }
 0x13f   : > { %v406_v16 = vpop.xlane.xlu1 %405 }
 0x140   : > { %v409_v17 = vmul.f32 %v407_v15, %v407_v15  ;;  %v408_v18 = vmul.f32 0.03125, %v406_v16  ;;  %v412_v22 = vsub.f32 %v401_v12, %v407_v15 }
 0x142   : > { %v410_v19 = vsub.f32 %v408_v18, %v409_v17 }
 0x144   : > { %v411_v20 = vmax.f32 %v410_v19, 0.0 }
 0x146   : > { %v413_v21 = vadd.f32 1e-12, %v411_v20 }
 0x148   : > { %634 = vrsqrt.f32 %v413_v21 }
 0x152   : > { %v635_v23 = vpop.eup %634 }
 0x153   : > { %v415_v25 = vmul.f32 %v635_v23, %v412_v22 }
 0x155   : > { %v423_v27 = vmul.f32 %v570_v24, %v415_v25 }
 0x157   : > { %v431_v28 = vadd.f32 %v571_v26, %v423_v27 }
 0x159   : > { %432 = vst [vmem:[%s348_s16] sm:$0xff] %v431_v28 }
 0x15a   : > { %661 = shalt.err (!%p658_p11)
}
 0x15b   : > { %s662_s2 = scalar_lea.hbm %s868_s25, 128  ;;  %s666_s9 = scalar_lea.hbm %s923_s8, 256 }
 0x15c   : > { %p663_p12 = scmp.ne.s32.totalorder %s868_s25, %s662_s2  ;;  %p667_p2 = scmp.lt.u32.totalorder %s868_s25, %s923_s8 }
 0x15d   : > { %p668_p3 = scmp.lt.u32.totalorder %s666_s9, %s662_s2  ;;  %p670_p5 = scmp.lt.u32.totalorder %s662_s2, %s868_s25 }
 0x15e   : > { %p664_p0 = pnand %p663_p12, %p821_p9 }
 0x15f   : > { %p669_p4 = por %p668_p3, %p667_p2 }
 0x160   : > { %p665_p1 = pneg %p664_p0 }
 0x161   : > { %p671_p6 = por %p670_p5, %p669_p4 }
 0x163   : > { %p672_p7 = pnand %p671_p6, %p665_p1 }
 0x165   : > { %675 = shalt.err (!%p672_p7)
}
 0x166   : > { %576 = dma.vmem_to_hbm [thread:$0]  (%p821_p9), %s870_s18, 128, %s868_s25, %s434_s26  }
 0x167 PF: > { %p582_p8 = scmp.ge.s32.totalorder %s728_s14, 2  ;;  %s460_s20 = sand.u32 1, %s708_s10  }
 0x168   : > { %s461_s23 = scalar_lea.sflag [#allocation5], %s460_s20 }
 0x169   : > { %p579_p10 = pnand %p582_p8, %p828_p13 }
 0x16b   : > { %703 = dma.done.wait (!%p579_p10), %s461_s23, 128  }
 0x16c   : > { %705 = vsyncadd (!%p579_p10), %s461_s23, 4294967168  ;;  %s27_s14 = sadd.s32 1, %s728_s14   ;;  %s928_s10 = smov %s712_s11 }
 0x16d   : > { %p24_p11 = scmp.ge.s32.totalorder %s27_s14, 4   ;;  %s929_s11 = smov %s716_s0 }
 0x16e   : > { %s930_s0 = smov %s834_s22  ;;  %s931_s12 = smov %s724_s13 }
 0x16f   : > { %s932_s13 = smov %s934_s17  ;;  %26 = sbr.rel (!%p24_p11) target bundleno = 19 (0x13), region = 92 }
 0x176   :  { %466 = vsyncpa [#allocation5], 1 }
 0x177   :  { %468 = vsyncpa [#allocation5 + $0x1], 1 }

</bundles_post_ra>
